<compile_context>
chip_gen: v6e
topology: v6e:2x2x1
jax: 0.10.0
libtpu: 0.0.40
codegen_flags: <defaults>
</compile_context>

<pallas_src>
import jax
import jax.numpy as jnp
from jax.experimental import pallas as pl
from jax.experimental.pallas import tpu as pltpu

_SUBLANES = 8
_LANES = 128


def _sphere_sdf_kernel(params_ref, pts_ref, out_ref):
    # params_ref: SMEM (4,) f32 = [cx, cy, cz, radius]
    # pts_ref:    VMEM (3, 8, TL) coordinate-major point tile
    # out_ref:    VMEM (8, TL) signed distances (dense lane-major stores)
    dx = pts_ref[0] - params_ref[0]
    dy = pts_ref[1] - params_ref[1]
    dz = pts_ref[2] - params_ref[2]
    out_ref[...] = jnp.sqrt(dx * dx + dy * dy + dz * dz) - params_ref[3]


def _round_up(x, m):
    return -(-x // m) * m


def _choose_tile_l(lanes_needed, *, max_tile_l=32768, min_steps=2,
                   single_step_lanes=8192):
    """Lane tile over the (N_pad / 8) axis.

    * lanes_needed <= 8192 (N <= ~64K points): one grid step -- per-step
      overhead dominates at this size, so avoid forcing extra steps.
    * Otherwise aim for >= min_steps (=2) grid steps (keeps both v7x
      TensorCores fed) with MiB-scale tiles, capped at 32768 lanes
      (3 MiB in + 1 MiB out per step; 8 MiB double-buffered, which fits
      v5e's 16 MiB default scoped-VMEM limit and v6e/v7x's 32 MiB).
    """
    if lanes_needed <= single_step_lanes:
        return max(_LANES, _round_up(lanes_needed, _LANES))
    t = _round_up(-(-lanes_needed // min_steps), _LANES)
    return max(_LANES, min(max_tile_l, t))


def sphere_sdf_coord_major(pts_t, params, *, return_padded=False):
    """pts_t: (3, N) float32 coordinate-major points; params: (4,) f32
    [cx, cy, cz, radius].

    Returns (N,) signed distances, or -- with return_padded=True -- the raw
    padded (8, l_pad) output buffer (point p lives at [p // l_pad, p % l_pad]),
    avoiding the tail-slice HBM copy for unaligned N.
    """
    n = pts_t.shape[1]
    lanes_needed = -(-n // _SUBLANES)
    tile_l = _choose_tile_l(lanes_needed)
    l_pad = _round_up(lanes_needed, tile_l)
    n_pad = _SUBLANES * l_pad

    if n_pad != n:
        pts_t = jnp.pad(pts_t, ((0, 0), (0, n_pad - n)))
    pts3 = pts_t.reshape(3, _SUBLANES, l_pad)  # row-major compatible, no copy

    grid = (l_pad // tile_l,)

    out = pl.pallas_call(
        _sphere_sdf_kernel,
        out_shape=jax.ShapeDtypeStruct((_SUBLANES, l_pad), jnp.float32),
        grid_spec=pl.GridSpec(
            grid=grid,
            in_specs=[
                # center + radius as SMEM scalars (no VMEM block / broadcast)
                pl.BlockSpec(memory_space=pltpu.MemorySpace.SMEM),
                pl.BlockSpec((3, _SUBLANES, tile_l), lambda i: (0, 0, i)),
            ],
            out_specs=pl.BlockSpec((_SUBLANES, tile_l), lambda i: (0, i)),
        ),
        compiler_params=pltpu.CompilerParams(
            dimension_semantics=("parallel",),  # megacore / v7x 2-TC sharding
        ),
    )(params, pts3)

    if return_padded:
        return out
    flat = out.reshape(-1)
    return flat if n_pad == n else flat[:n]


@jax.jit
def sphere_sdf(sample_points, center, radius):
    """sample_points: (..., 3); center: (3,) or (1,3); radius: scalar.

    Returns (N, 1) signed distances, N = prod(leading dims).
    """
    pts = sample_points.reshape(-1, 3).astype(jnp.float32)
    n = pts.shape[0]

    params = jnp.concatenate(
        [
            center.reshape(-1).astype(jnp.float32)[:3],
            jnp.asarray(radius, jnp.float32).reshape(1),
        ]
    )  # (4,) = [cx, cy, cz, r] -> SMEM

    # TODO(synk): for best end-to-end throughput, produce sample_points
    # coordinate-major upstream and call sphere_sdf_coord_major directly
    # (optionally with return_padded=True); the transpose below is the single
    # remaining HBM relayout copy (padding/reshape fuse into it).
    pts_t = pts.T  # (3, N)

    return sphere_sdf_coord_major(pts_t, params).reshape(n, 1)


if __name__ == "__main__":
    key = jax.random.PRNGKey(0)

    # Deterministic parameters (shapes per the module __init__):
    #   radius: scalar, center: (3,) (torch stores it unsqueezed to (1, 3)).
    radius = jnp.float32(1.0)
    center = jnp.array([0.1, -0.2, 0.3], dtype=jnp.float32)

    def _ref(sample_points):
        pts = sample_points.reshape(-1, 3)
        return jnp.linalg.norm(pts - center[None, :], axis=-1, keepdims=True) - radius

    ok = True

    # Case 1: small, unaligned N (exercises pad + tail-slice path).
    sp1 = jax.random.normal(key, (16, 16, 3), dtype=jnp.float32)
    out1 = jax.block_until_ready(sphere_sdf(sp1, center, radius))
    ref1 = _ref(sp1)
    ok &= out1.shape == ref1.shape == (16 * 16, 1)
    ok &= bool(jnp.allclose(out1, ref1, atol=1e-5, rtol=1e-5))

    # Case 2: aligned N (single grid step, no pad, no tail slice).
    sp2 = jax.random.normal(jax.random.PRNGKey(1), (64, 128, 3), dtype=jnp.float32)
    out2 = jax.block_until_ready(sphere_sdf(sp2, center, radius))
    ref2 = _ref(sp2)
    ok &= out2.shape == ref2.shape == (64 * 128, 1)
    ok &= bool(jnp.allclose(out2, ref2, atol=1e-5, rtol=1e-5))

    assert ok
    print("KERNEL_OK")
</pallas_src>

<mosaic_0001>
module attributes {stable_mosaic.version = 11 : i64} {
  func.func @_sphere_sdf_kernel(%arg0: i32, %arg1: memref<4xf32, #tpu.memory_space<smem>>, %arg2: memref<3x8x128xf32, #tpu.memory_space<vmem>>, %arg3: memref<8x128xf32, #tpu.memory_space<vmem>>) attributes {dimension_semantics = [#tpu.dimension_semantics<parallel>], iteration_bounds = array<i64: 1>, scalar_prefetch = 0 : i64, scratch_operands = 0 : i64, tpu.core_type = #tpu.core_type<tc>, window_params = [{transform_indices = @transform_0, window_bounds = array<i64: 4>}, {transform_indices = @transform_1, window_bounds = array<i64: 3, 8, 128>}, {transform_indices = @transform_2, window_bounds = array<i64: 8, 128>}]} {
    %c0 = arith.constant 0 : index
    %c0_0 = arith.constant 0 : index
    %c0_1 = arith.constant 0 : index
    %0 = vector.load %arg2[%c0, %c0_0, %c0_1] : memref<3x8x128xf32, #tpu.memory_space<vmem>>, vector<1x8x128xf32>
    %1 = vector.shape_cast %0 : vector<1x8x128xf32> to vector<8x128xf32>
    %c0_2 = arith.constant 0 : index
    %2 = memref.load %arg1[%c0_2] : memref<4xf32, #tpu.memory_space<smem>>
    %3 = vector.broadcast %2 : f32 to vector<8x128xf32>
    %4 = arith.subf %1, %3 : vector<8x128xf32>
    %c1 = arith.constant 1 : index
    %c0_3 = arith.constant 0 : index
    %c0_4 = arith.constant 0 : index
    %5 = vector.load %arg2[%c1, %c0_3, %c0_4] : memref<3x8x128xf32, #tpu.memory_space<vmem>>, vector<1x8x128xf32>
    %6 = vector.shape_cast %5 : vector<1x8x128xf32> to vector<8x128xf32>
    %c1_5 = arith.constant 1 : index
    %7 = memref.load %arg1[%c1_5] : memref<4xf32, #tpu.memory_space<smem>>
    %8 = vector.broadcast %7 : f32 to vector<8x128xf32>
    %9 = arith.subf %6, %8 : vector<8x128xf32>
    %c2 = arith.constant 2 : index
    %c0_6 = arith.constant 0 : index
    %c0_7 = arith.constant 0 : index
    %10 = vector.load %arg2[%c2, %c0_6, %c0_7] : memref<3x8x128xf32, #tpu.memory_space<vmem>>, vector<1x8x128xf32>
    %11 = vector.shape_cast %10 : vector<1x8x128xf32> to vector<8x128xf32>
    %c2_8 = arith.constant 2 : index
    %12 = memref.load %arg1[%c2_8] : memref<4xf32, #tpu.memory_space<smem>>
    %13 = vector.broadcast %12 : f32 to vector<8x128xf32>
    %14 = arith.subf %11, %13 : vector<8x128xf32>
    %15 = arith.mulf %4, %4 : vector<8x128xf32>
    %16 = arith.mulf %9, %9 : vector<8x128xf32>
    %17 = arith.addf %15, %16 : vector<8x128xf32>
    %18 = arith.mulf %14, %14 : vector<8x128xf32>
    %19 = arith.addf %17, %18 : vector<8x128xf32>
    %20 = math.sqrt %19 : vector<8x128xf32>
    %c3 = arith.constant 3 : index
    %21 = memref.load %arg1[%c3] : memref<4xf32, #tpu.memory_space<smem>>
    %22 = vector.broadcast %21 : f32 to vector<8x128xf32>
    %23 = arith.subf %20, %22 : vector<8x128xf32>
    %c0_9 = arith.constant 0 : index
    %c0_10 = arith.constant 0 : index
    %24 = vector.load %arg3[%c0_9, %c0_10] : memref<8x128xf32, #tpu.memory_space<vmem>>, vector<8x128xf32>
    tpu.vector_store %arg3[%c0_9, %c0_10], %23 {strides = array<i32>} : memref<8x128xf32, #tpu.memory_space<vmem>>, vector<8x128xf32>,
    return
  }
  func.func @transform_0(%arg0: i32) -> i32 {
    %c0_i32 = arith.constant 0 : i32
    %c0_i32_0 = arith.constant 0 : i32
    return %c0_i32 : i32
  }
  func.func @transform_1(%arg0: i32) -> (i32, i32, i32) {
    %c0_i32 = arith.constant 0 : i32
    %c0_i32_0 = arith.constant 0 : i32
    %c0_i32_1 = arith.constant 0 : i32
    return %c0_i32, %c0_i32_0, %arg0 : i32, i32, i32
  }
  func.func @transform_2(%arg0: i32) -> (i32, i32) {
    %c0_i32 = arith.constant 0 : i32
    %c0_i32_0 = arith.constant 0 : i32
    return %c0_i32, %arg0 : i32, i32
  }
}

</mosaic_0001>

<bundles_post_ra>
// kernel: sphere_sdf.1
= control target key start
LH: loop header
LB: loop body
LE: loop exit
PB: predicated region body
PF: predicated region fallthrough
CT: control target
= control target key end

     0   :  { %7 = vsyncpa [#allocation3], 0  ;;  %s112_s0 = inlined_call_operand.vmem [shape: f32[4], index: 0, kind: input, shape index: {}]   ;;  %s113_s1 = inlined_call_operand.vmem [shape: f32[3,8,128], index: 1, kind: input, shape index: {}]   ;;  %s114_s2 = inlined_call_operand.vmem [shape: f32[8,128], index: 2, kind: output, shape index: {}]  }
   0x1   :  { %s14_s11 = sshll.u32 %s112_s0, 4  ;;  %s15_s11 = int_to_ptr.vmem [resolvable:$true] %s14_s11 }
   0x2   :  { %s67_s12 = scalar_lea.vmem %s15_s11, 16  ;;  %p72_p1 = scmp.lt.s32.totalorder %s15_s11, %s15_s11 }
   0x3   :  { %p68_p0 = scmp.ne.s32.totalorder %s15_s11, %s67_s12  ;;  %p73_p2 = scmp.lt.s32.totalorder %s67_s12, %s67_s12 }
   0x5   :  { %p74_p3 = por %p73_p2, %p72_p1 }
   0x7   :  { %p75_p4 = pnand %p74_p3, %p68_p0 }
   0x9   :  { %78 = shalt.err (!%p75_p4)
}
   0xa   :  { %s81_s13 = smov [#allocation2]  }
   0xb   :  { %17 = dma.vmem_to_smem %s15_s11, 16, %s81_s13, [#allocation3]  }
   0xc   :  { %79 = dma.done.wait [#allocation3], 16  }
   0xd   :  { %80 = vsyncadd [#allocation3], 4294967280 }
   0xe   :  { %23 = sfence }
   0xf   :  { %s25_s14 = sld [smem:[#allocation2]]  ;;  %v24_v0 = vld [vmem:[%s113_s1] sm:$0xff]  ;;  %v59_v1 = vld [vmem:[%s113_s1 + $0x8] sm:$0xff]  ;;  %v61_v3 = vld [vmem:[%s113_s1 + $0x10] sm:$0xff] }
  0x10   :  { %s60_s15 = sld [smem:[#allocation2 + $0x1]] }
  0x11   :  { %s62_s16 = sld [smem:[#allocation2 + $0x2]] }
  0x12   :  { %s63_s22 = sld [smem:[#allocation2 + $0x3]] }
  0x15   :  { %v26_v2 = vstv %s25_s14 }
  0x16   :  { %v27_v4 = vsub.f32 %v24_v0, %v26_v2  ;;  %v31_v5 = vstv %s60_s15 }
  0x17   :  { %v32_v6 = vsub.f32 %v59_v1, %v31_v5  ;;  %v36_v7 = vstv %s62_s16 }
  0x18   :  { %v37_v8 = vsub.f32 %v61_v3, %v36_v7  ;;  %v38_v9 = vmul.f32 %v27_v4, %v27_v4  ;;  %v51_v17 = vstv %s63_s22 }
  0x19   :  { %v39_v10 = vmul.f32 %v32_v6, %v32_v6 }
  0x1a   :  { %v41_v11 = vmul.f32 %v37_v8, %v37_v8 }
  0x1b   :  { %v40_v12 = vadd.f32 %v39_v10, %v38_v9 }
  0x1d   :  { %v42_v13 = vadd.f32 %v41_v11, %v40_v12 }
  0x1f   :  { %65 = vrsqrt.f32 %v42_v13  ;;  %vm45_vm0 = vcmp.eq.f32.partialorder %v42_v13, inf  ;;  %v48_v15 = vand.u32 2147483648, %v42_v13  ;;  %vm47_vm1 = vcmp.eq.f32.partialorder %v42_v13, 0.0 }
  0x2c   :  { %v66_v14 = vpop.eup %65 }
  0x2d   :  { %v44_v16 = vmul.f32 %v66_v14, %v42_v13 }
  0x2f   :  { %v46_v18 = vsel %vm45_vm0, %v42_v13, %v44_v16 }
  0x30   :  { %v49_v19 = vsel %vm47_vm1, %v48_v15, %v46_v18 }
  0x31   :  { %v52_v20 = vsub.f32 %v49_v19, %v51_v17 }
  0x33   :  { %53 = vst [vmem:[%s114_s2] sm:$0xff] %v52_v20 }
  0x34   :  { %58 = vsyncpa [#allocation3], 1 }

</bundles_post_ra>
